<compile_context>
chip_gen: v7x
topology: tpu7x:2x2x1
jax: 0.10.0
libtpu: 0.0.40
codegen_flags: <defaults>
</compile_context>

<pallas_src>
from functools import partial

import jax
import jax.numpy as jnp
from jax.experimental import pallas as pl
from jax.experimental.pallas import tpu as pltpu

# Derived from tile footprint (<~10 MiB/step incl. double buffering); valid on
# v7x (64 MiB physical VMEM) as well as v5e/v6e.
_VMEM_LIMIT = 32 * 1024 * 1024

_ACT_DTYPE = jnp.bfloat16  # network-wide activation dtype


def _round_up(x, m):
    return (x + m - 1) // m * m


# ----------------------------------------------------------------------------
# Tiled GEMM kernels with fused BN / activation / gating / residual epilogues
# ----------------------------------------------------------------------------
def _epilogue(mode, acc, s_ref, t_ref, extras):
    """acc is f32 (tm, tn); s/t are (1, tn) f32; extras are bf16 (tm, tn)."""
    y = acc * s_ref[...] + t_ref[...]
    if mode == "relu":
        y = jnp.maximum(y, 0.0)
    elif mode == "sigmoid":
        y = jax.nn.sigmoid(y)
    elif mode == "gate":          # m * sigmoid(bn(conv)) + d   (DA / SG)
        m_ref, d_ref = extras
        y = (m_ref[...].astype(jnp.float32) * jax.nn.sigmoid(y)
             + d_ref[...].astype(jnp.float32))
    elif mode == "res":           # relu(bn(conv) + residual)   (BasicBlock)
        (r_ref,) = extras
        y = jnp.maximum(y + r_ref[...].astype(jnp.float32), 0.0)
    return y


def _make_gemm_kernel(mode, multi_k):
    if multi_k:
        def kernel(a_ref, b_ref, s_ref, t_ref, *rest):
            *extras, o_ref, acc_ref = rest

            @pl.when(pl.program_id(2) == 0)
            def _init():
                acc_ref[...] = jnp.zeros_like(acc_ref)

            acc_ref[...] += jnp.dot(a_ref[...], b_ref[...],
                                    preferred_element_type=jnp.float32)

            @pl.when(pl.program_id(2) == pl.num_programs(2) - 1)
            def _fin():
                y = _epilogue(mode, acc_ref[...], s_ref, t_ref, extras)
                o_ref[...] = y.astype(o_ref.dtype)
    else:
        # Whole K fits one tile: single-shot, no scratch / no pl.when phases.
        def kernel(a_ref, b_ref, s_ref, t_ref, *rest):
            *extras, o_ref = rest
            acc = jnp.dot(a_ref[...], b_ref[...],
                          preferred_element_type=jnp.float32)
            o_ref[...] = _epilogue(mode, acc, s_ref, t_ref, extras).astype(o_ref.dtype)

    return kernel


_TK_CANDS = (2048, 1536, 1280, 1152, 1024, 896, 768, 640, 512, 384, 256, 128)


def _pick_tk(K):
    """K tile: a lane-aligned divisor of K (exact -> no K padding / masking),
    else the full K as a single block (block dim == array dim is allowed)."""
    if K % 128 == 0:
        for c in _TK_CANDS:
            if c <= K and K % c == 0:
                return c
    return K


def _gemm_call(mode, a, b, scale, shift, extras, out_dtype):
    """Tiled GEMM; extras are (M, N) epilogue inputs (gating / residual)."""
    M, K = a.shape
    _, N = b.shape
    tm = min(256, _round_up(M, 16))
    tn = N if N <= 512 else 512
    tk = _pick_tk(K)
    nk = K // tk
    multi_k = nk > 1

    a = a.astype(jnp.bfloat16)
    b = b.astype(jnp.bfloat16)
    s2 = scale.reshape(1, N).astype(jnp.float32)
    t2 = shift.reshape(1, N).astype(jnp.float32)

    kernel = _make_gemm_kernel(mode, multi_k)

    if multi_k:
        grid = (pl.cdiv(M, tm), pl.cdiv(N, tn), nk)
        in_specs = [
            pl.BlockSpec((tm, tk), lambda i, j, k: (i, k)),
            pl.BlockSpec((tk, tn), lambda i, j, k: (k, j)),
            pl.BlockSpec((1, tn), lambda i, j, k: (0, j)),
            pl.BlockSpec((1, tn), lambda i, j, k: (0, j)),
        ]
        # block index constant across k -> fetched once per (i, j) output tile
        extra_spec = pl.BlockSpec((tm, tn), lambda i, j, k: (i, j))
        out_spec = pl.BlockSpec((tm, tn), lambda i, j, k: (i, j))
        scratch = [pltpu.VMEM((tm, tn), jnp.float32)]
        semantics = ("parallel", "parallel", "arbitrary")
    else:
        grid = (pl.cdiv(M, tm), pl.cdiv(N, tn))
        in_specs = [
            pl.BlockSpec((tm, K), lambda i, j: (i, 0)),
            pl.BlockSpec((K, tn), lambda i, j: (0, j)),
            pl.BlockSpec((1, tn), lambda i, j: (0, j)),
            pl.BlockSpec((1, tn), lambda i, j: (0, j)),
        ]
        extra_spec = pl.BlockSpec((tm, tn), lambda i, j: (i, j))
        out_spec = pl.BlockSpec((tm, tn), lambda i, j: (i, j))
        scratch = []
        semantics = ("parallel", "parallel")

    args = [a, b, s2, t2]
    for e in extras:
        in_specs.append(extra_spec)
        args.append(e.astype(jnp.bfloat16))

    return pl.pallas_call(
        kernel,
        out_shape=jax.ShapeDtypeStruct((M, N), out_dtype),
        grid=grid,
        in_specs=in_specs,
        out_specs=out_spec,
        scratch_shapes=scratch,
        compiler_params=pltpu.CompilerParams(
            dimension_semantics=semantics,
            vmem_limit_bytes=_VMEM_LIMIT),
    )(*args)


# ----------------------------------------------------------------------------
# Lane-dense tiled elementwise kernels
# ----------------------------------------------------------------------------
def _add2_kernel(a_ref, b_ref, o_ref):
    o_ref[...] = a_ref[...] + b_ref[...]


def _add3_kernel(a_ref, b_ref, c_ref, o_ref):
    o_ref[...] = a_ref[...] + b_ref[...] + c_ref[...]


def _maxn_kernel(*refs):
    o_ref = refs[-1]
    m = refs[0][...]
    for r in refs[1:-1]:
        m = jnp.maximum(m, r[...])
    o_ref[...] = m


def _ew_call(kernel, *arrs):
    """Lane-dense, tiled elementwise Pallas call on same-shaped tensors."""
    shp = arrs[0].shape
    T = arrs[0].size
    L = shp[-1]
    for cand in (512, 256, 128):
        if T % cand == 0:
            L = cand
            break
    R = T // L
    br = min(512, _round_up(R, 16))
    flat = [a.reshape(R, L) for a in arrs]
    out = pl.pallas_call(
        kernel,
        out_shape=jax.ShapeDtypeStruct((R, L), flat[0].dtype),
        grid=(pl.cdiv(R, br),),
        in_specs=[pl.BlockSpec((br, L), lambda i: (i, 0)) for _ in arrs],
        out_specs=pl.BlockSpec((br, L), lambda i: (i, 0)),
        compiler_params=pltpu.CompilerParams(
            dimension_semantics=("parallel",),
            vmem_limit_bytes=_VMEM_LIMIT),
    )(*flat)
    return out.reshape(shp)


_ew = jax.jit(_ew_call, static_argnums=(0,))
add2 = partial(_ew, _add2_kernel)   # a + b
add3 = partial(_ew, _add3_kernel)   # a + b + c


@jax.jit
def maxpool3x3s2(x):
    """MaxPool2d(kernel=3, stride=2, padding=1) on NHWC: 9-way VPU max tree
    over shifted strided views, one tiled elementwise Pallas kernel."""
    N, H, W, C = x.shape
    Ho = (H + 2 - 3) // 2 + 1
    Wo = (W + 2 - 3) // 2 + 1
    xp = jnp.pad(x, ((0, 0), (1, 1), (1, 1), (0, 0)), constant_values=-jnp.inf)
    taps = [
        xp[:, i: i + 2 * (Ho - 1) + 1: 2, j: j + 2 * (Wo - 1) + 1: 2, :]
        for i in range(3) for j in range(3)
    ]
    return _ew(_maxn_kernel, *taps)


# ----------------------------------------------------------------------------
# Conv = im2col (bf16 glue) + tiled Pallas GEMM with fused epilogue
# ----------------------------------------------------------------------------
def _fold_bn(bias, bn, cout):
    if bn is None:
        scale = jnp.ones((cout,), jnp.float32)
        shift = bias if bias is not None else jnp.zeros((cout,), jnp.float32)
    else:
        gamma, beta, mean, var = bn
        scale = gamma / jnp.sqrt(var + 1e-5)
        shift = beta - mean * scale
        if bias is not None:
            shift = shift + bias * scale
    return scale, shift


def _conv2d_impl(x, w, bias, bn, *, stride, padding, act=None,
                 mul=None, add=None, res=None, out_dtype=_ACT_DTYPE):
    """x: NHWC bf16, w: PyTorch layout (Cout, Cin, kh, kw).
    bn = (gamma, beta, mean, var) or None.
    Optional fused epilogues:
      mul/add -> out = mul * sigmoid(conv_bn(x)) + add   (DA / SG gating)
      res     -> out = relu(conv_bn(x) + res)            (BasicBlock residual)
    """
    N, H, W, _ = x.shape
    Cout, Cin, kh, kw = w.shape
    if kh == 1 and kw == 1 and stride == 1 and padding == 0:
        Ho, Wo = H, W
        a = x.reshape(N * H * W, Cin)
    else:
        # TODO(synk): im2col still materializes the patch tensor (bf16 halves
        # the traffic); an implicit-GEMM K-axis index_map would remove it.
        xp = jnp.pad(x, ((0, 0), (padding, padding), (padding, padding), (0, 0)))
        Ho = (H + 2 * padding - kh) // stride + 1
        Wo = (W + 2 * padding - kw) // stride + 1
        cols = jnp.concatenate(
            [
                xp[:, i: i + stride * (Ho - 1) + 1: stride,
                   j: j + stride * (Wo - 1) + 1: stride, :]
                for i in range(kh) for j in range(kw)
            ],
            axis=-1,
        )
        a = cols.reshape(N * Ho * Wo, kh * kw * Cin)

    bmat = jnp.transpose(w, (2, 3, 1, 0)).reshape(kh * kw * Cin, Cout)
    scale, shift = _fold_bn(bias, bn, Cout)

    if mul is not None:
        mode = "gate"
        extras = [mul.reshape(-1, Cout), add.reshape(-1, Cout)]
    elif res is not None:
        mode = "res"
        extras = [res.reshape(-1, Cout)]
    else:
        mode = act
        extras = []

    out = _gemm_call(mode, a, bmat, scale, shift, extras, out_dtype)
    return out.reshape(N, Ho, Wo, Cout)


conv2d = partial(jax.jit, static_argnames=("stride", "padding", "act",
                                           "out_dtype"))(_conv2d_impl)


def _bilinear_resize_impl(x, *, out_h, out_w):
    """F.interpolate(mode='bilinear', align_corners=True) on NHWC.
    TODO(synk): gather-heavy, not the hot path -> kept as plain-JAX glue."""
    N, H, W, C = x.shape
    if out_h == H and out_w == W:
        return x

    def coords(out_s, in_s):
        if out_s == 1 or in_s == 1:
            return jnp.zeros((out_s,), jnp.float32)
        return jnp.arange(out_s, dtype=jnp.float32) * (in_s - 1) / (out_s - 1)

    ys = coords(out_h, H)
    xs = coords(out_w, W)
    y0 = jnp.floor(ys).astype(jnp.int32)
    y1 = jnp.minimum(y0 + 1, H - 1)
    x0 = jnp.floor(xs).astype(jnp.int32)
    x1 = jnp.minimum(x0 + 1, W - 1)
    wy = (ys - y0.astype(jnp.float32))[None, :, None, None]
    wx = (xs - x0.astype(jnp.float32))[None, None, :, None]
    top = x[:, y0][:, :, x0] * (1.0 - wx) + x[:, y0][:, :, x1] * wx
    bot = x[:, y1][:, :, x0] * (1.0 - wx) + x[:, y1][:, :, x1] * wx
    return (top * (1.0 - wy) + bot * wy).astype(x.dtype)


bilinear_resize = partial(jax.jit, static_argnames=("out_h", "out_w"))(
    _bilinear_resize_impl)


# ----------------------------------------------------------------------------
# Parameter init (deterministic, synthetic)
# ----------------------------------------------------------------------------
class KeyGen:
    def __init__(self, seed):
        self.key = jax.random.PRNGKey(seed)

    def __call__(self):
        self.key, sub = jax.random.split(self.key)
        return sub


def init_conv(kg, cin, cout, k, bias=False):
    fan_in = cin * k * k
    w = jax.random.normal(kg(), (cout, cin, k, k), jnp.float32) * jnp.sqrt(2.0 / fan_in)
    b = jnp.zeros((cout,), jnp.float32) if bias else None
    return {"w": w, "b": b}


def init_bn(c):
    # fresh-init BatchNorm2d in eval mode: gamma=1, beta=0, mean=0, var=1
    return (jnp.ones((c,), jnp.float32), jnp.zeros((c,), jnp.float32),
            jnp.zeros((c,), jnp.float32), jnp.ones((c,), jnp.float32))


def init_basic_block(kg, cin, cout, stride):
    p = {
        "conv1": init_conv(kg, cin, cout, 3),
        "bn1": init_bn(cout),
        "conv2": init_conv(kg, cout, cout, 3),
        "bn2": init_bn(cout),
    }
    if stride != 1 or cin != cout:
        p["down"] = {"conv": init_conv(kg, cin, cout, 1), "bn": init_bn(cout)}
    return p


def basic_block(p, x, stride):
    out = conv2d(x, p["conv1"]["w"], None, p["bn1"],
                 stride=stride, padding=1, act="relu")
    if "down" in p:
        idn = conv2d(x, p["down"]["conv"]["w"], None, p["down"]["bn"],
                     stride=stride, padding=0)
    else:
        idn = x
    # residual add + relu fused into the second conv's GEMM epilogue
    return conv2d(out, p["conv2"]["w"], None, p["bn2"],
                  stride=1, padding=1, res=idn)


def init_resnet34(kg, in_ch):
    def stage(cin, cout, n, stride):
        blocks = [init_basic_block(kg, cin, cout, stride)]
        for _ in range(n - 1):
            blocks.append(init_basic_block(kg, cout, cout, 1))
        return blocks

    return {
        "conv1": init_conv(kg, in_ch, 64, 7),
        "bn1": init_bn(64),
        "layer1": stage(64, 64, 3, 1),
        "layer2": stage(64, 128, 4, 2),
        "layer3_1": stage(128, 256, 6, 2),
        "layer4_1": stage(256, 512, 3, 2),
    }


def run_stage(blocks, x, stride):
    x = basic_block(blocks[0], x, stride)
    for b in blocks[1:]:
        x = basic_block(b, x, 1)
    return x


# TODO(synk): exact DA / yfusion / yfusion_layer4 / SG internals are not in the
# provided source; channel/resolution-consistent definitions are used below.
def init_da(kg, cin, cout):
    return {"conv": init_conv(kg, cin, cout, 3), "bn": init_bn(cout)}


def da_forward(p, rgb, depth):
    # rgb * sigmoid(conv_bn(depth)) + depth, gating fused into GEMM epilogue
    return conv2d(depth, p["conv"]["w"], None, p["bn"],
                  stride=1, padding=1, mul=rgb, add=depth)


def init_yfusion(kg, pre_in, inc):
    return {
        "pre_conv": init_conv(kg, pre_in, inc, 1),
        "pre_bn": init_bn(inc),
        "fuse_conv": init_conv(kg, inc, inc, 3),
        "fuse_bn": init_bn(inc),
    }


def yfusion_forward(p, x, depth_da, pre):
    pre = conv2d(pre, p["pre_conv"]["w"], None, p["pre_bn"],
                 stride=1, padding=0, act="relu")
    pre = bilinear_resize(pre, out_h=x.shape[1], out_w=x.shape[2])
    fused = add3(x, depth_da, pre)
    return conv2d(fused, p["fuse_conv"]["w"], None, p["fuse_bn"],
                  stride=1, padding=1, act="relu")


def init_yfusion4(kg, c):
    return {"conv": init_conv(kg, c, c, 3), "bn": init_bn(c)}


def yfusion4_forward(p, x, depth_da):
    return conv2d(add2(x, depth_da), p["conv"]["w"], None, p["bn"],
                  stride=1, padding=1, act="relu")


def init_sg(kg, cin, cout):
    return {
        "gate": init_conv(kg, cin, cin, 1),
        "gate_bn": init_bn(cin),
        "conv": init_conv(kg, cin, cout, 3),
        "bn": init_bn(cout),
    }


def sg_forward(p, high, low):
    high = bilinear_resize(high, out_h=low.shape[1], out_w=low.shape[2])
    # high * sigmoid(conv1x1_bn(low)) + low, gating fused into GEMM epilogue
    fused = conv2d(low, p["gate"]["w"], None, p["gate_bn"],
                   stride=1, padding=0, mul=high, add=low)
    return conv2d(fused, p["conv"]["w"], None, p["bn"],
                  stride=1, padding=1, act="relu")


# ----------------------------------------------------------------------------
# BBSNet
# ----------------------------------------------------------------------------
def init_bbsnet(kg, n_class):
    return {
        "resnet": init_resnet34(kg, 3),
        "resnet_depth": init_resnet34(kg, 1),
        "da1": init_da(kg, 64, 64),
        "da2": init_da(kg, 64, 64),
        "da3": init_da(kg, 128, 128),
        "da4": init_da(kg, 256, 256),
        "da5": init_da(kg, 512, 512),
        "fusions": [
            init_yfusion(kg, 128, 64),
            init_yfusion(kg, 128, 64),
            init_yfusion(kg, 256, 128),
            init_yfusion(kg, 512, 256),
        ],
        "fusion_layer4": init_yfusion4(kg, 512),
        "conv1": init_conv(kg, 64, 128, 3, bias=True),
        "conv_end": init_conv(kg, 64, n_class, 1, bias=True),
        "sgs": [
            init_sg(kg, 256, 128),
            init_sg(kg, 128, 64),
            init_sg(kg, 64, 64),
            init_sg(kg, 64, 64),
        ],
        # ConvTranspose2d(512, 256, k=1, p=0, s=1): weight layout (in, out, 1, 1)
        "transconv": {
            "w": jax.random.normal(kg(), (512, 256, 1, 1), jnp.float32) * jnp.sqrt(2.0 / 512),
            "b": jnp.zeros((256,), jnp.float32),
        },
        "bn": init_bn(256),
        "conv_aux1": init_conv(kg, 128, n_class, 1, bias=True),
        "conv_aux2": init_conv(kg, 64, n_class, 1, bias=True),
        "conv_aux3": init_conv(kg, 64, n_class, 1, bias=True),
        "conv_aux4": init_conv(kg, 64, n_class, 1, bias=True),
    }


def bbsnet_forward(p, x, x_depth):
    """x, x_depth: NCHW (PyTorch convention). Returns NCHW segmentation logits
    (eval mode)."""
    x = jnp.transpose(x, (0, 2, 3, 1)).astype(_ACT_DTYPE)                     # NHWC
    x_depth = jnp.transpose(x_depth[:, :1], (0, 2, 3, 1)).astype(_ACT_DTYPE)  # 1st depth ch

    r, rd = p["resnet"], p["resnet_depth"]

    x1 = conv2d(x, r["conv1"]["w"], None, r["bn1"], stride=2, padding=3, act="relu")
    xd1 = conv2d(x_depth, rd["conv1"]["w"], None, rd["bn1"], stride=2, padding=3, act="relu")
    da_conv1 = da_forward(p["da1"], x1, xd1)

    x2 = run_stage(r["layer1"], maxpool3x3s2(x1), 1)
    xd2 = run_stage(rd["layer1"], maxpool3x3s2(xd1), 1)
    da_layer1 = da_forward(p["da2"], x2, xd2)

    x3 = run_stage(r["layer2"], x2, 2)
    xd3 = run_stage(rd["layer2"], xd2, 2)
    da_layer2 = da_forward(p["da3"], x3, xd3)

    x4 = run_stage(r["layer3_1"], x3, 2)
    xd4 = run_stage(rd["layer3_1"], xd3, 2)
    da_layer3 = da_forward(p["da4"], x4, xd4)

    x5 = run_stage(r["layer4_1"], x4, 2)
    xd5 = run_stage(rd["layer4_1"], xd4, 2)
    da_layer4 = da_forward(p["da5"], x5, xd5)

    layer4_fusion = yfusion4_forward(p["fusion_layer4"], x5, da_layer4)
    layer3_fusion = yfusion_forward(p["fusions"][3], x4, da_layer3, layer4_fusion)
    layer2_fusion = yfusion_forward(p["fusions"][2], x3, da_layer2, layer3_fusion)
    layer1_fusion = yfusion_forward(p["fusions"][1], x2, da_layer1, layer2_fusion)
    pre_layer1 = conv2d(layer1_fusion, p["conv1"]["w"], p["conv1"]["b"], None,
                        stride=1, padding=1)
    conv1_fusion = yfusion_forward(p["fusions"][0], x1, da_conv1, pre_layer1)

    # ConvTranspose 1x1 == 1x1 conv with transposed weight; BN fused into GEMM.
    tw = jnp.transpose(p["transconv"]["w"], (1, 0, 2, 3))
    l4 = conv2d(layer4_fusion, tw, p["transconv"]["b"], p["bn"],
                stride=1, padding=0)
    h, w_ = layer3_fusion.shape[1], layer3_fusion.shape[2]
    l4 = bilinear_resize(l4, out_h=h, out_w=w_)

    out1 = sg_forward(p["sgs"][0], l4, layer3_fusion)
    out2 = sg_forward(p["sgs"][1], out1, layer2_fusion)
    out3 = sg_forward(p["sgs"][2], out2, layer1_fusion)
    out4 = sg_forward(p["sgs"][3], out3, conv1_fusion)
    out = conv2d(out4, p["conv_end"]["w"], p["conv_end"]["b"], None,
                 stride=1, padding=0, out_dtype=jnp.float32)

    # TODO(synk): eval mode — aux heads (conv_aux1..3) are unused in the
    # reference eval path and therefore not computed.
    return jnp.transpose(out, (0, 3, 1, 2))  # back to NCHW


if __name__ == "__main__":
    key = jax.random.PRNGKey(0)
    k1, k2 = jax.random.split(key)
    # small shapes: batch=2, 3-channel RGB + depth, 32x32 spatial, n_class=5
    x = jax.random.normal(k1, (2, 3, 32, 32), jnp.float32)
    x_depth = jax.random.normal(k2, (2, 3, 32, 32), jnp.float32)

    params = init_bbsnet(KeyGen(42), n_class=5)
    out = bbsnet_forward(params, x, x_depth)
    out = jax.block_until_ready(out)

    assert out.shape == (2, 5, 16, 16), out.shape
    assert bool(jnp.all(jnp.isfinite(out)))
    print("KERNEL_OK")
</pallas_src>

<mosaic_0001>
module attributes {stable_mosaic.version = 11 : i64} {
  func.func @kernel(%arg0: i32, %arg1: i32, %arg2: memref<256x147xbf16, #tpu.memory_space<vmem>>, %arg3: memref<147x64xbf16, #tpu.memory_space<vmem>>, %arg4: memref<1x64xf32, #tpu.memory_space<vmem>>, %arg5: memref<1x64xf32, #tpu.memory_space<vmem>>, %arg6: memref<256x64xbf16, #tpu.memory_space<vmem>>) attributes {dimension_semantics = [#tpu.dimension_semantics<parallel>, #tpu.dimension_semantics<parallel>], iteration_bounds = array<i64: 2, 1>, scalar_prefetch = 0 : i64, scratch_operands = 0 : i64, tpu.core_type = #tpu.core_type<tc>, window_params = [{transform_indices = @transform_0, window_bounds = array<i64: 256, 147>}, {transform_indices = @transform_1, window_bounds = array<i64: 147, 64>}, {transform_indices = @transform_2, window_bounds = array<i64: 1, 64>}, {transform_indices = @transform_3, window_bounds = array<i64: 1, 64>}, {transform_indices = @transform_4, window_bounds = array<i64: 256, 64>}]} {
    %c0 = arith.constant 0 : index
    %c0_0 = arith.constant 0 : index
    %0 = vector.load %arg2[%c0, %c0_0] : memref<256x147xbf16, #tpu.memory_space<vmem>>, vector<256x147xbf16>
    %c0_1 = arith.constant 0 : index
    %c0_2 = arith.constant 0 : index
    %1 = vector.load %arg3[%c0_1, %c0_2] : memref<147x64xbf16, #tpu.memory_space<vmem>>, vector<147x64xbf16>
    %cst = arith.constant dense<0.000000e+00> : vector<256x64xf32>
    %2 = tpu.matmul %0, %1, %cst {dimension_numbers = #tpu.dot_dimension_numbers<[1], [0], [0], [1], [0, 0, 1, 1], [], []>} : vector<256x147xbf16>, vector<147x64xbf16>, vector<256x64xf32> -> vector<256x64xf32>
    %c0_3 = arith.constant 0 : index
    %c0_4 = arith.constant 0 : index
    %3 = vector.load %arg4[%c0_3, %c0_4] : memref<1x64xf32, #tpu.memory_space<vmem>>, vector<1x64xf32>
    %4 = vector.broadcast %3 : vector<1x64xf32> to vector<256x64xf32>
    %5 = arith.mulf %2, %4 : vector<256x64xf32>
    %c0_5 = arith.constant 0 : index
    %c0_6 = arith.constant 0 : index
    %6 = vector.load %arg5[%c0_5, %c0_6] : memref<1x64xf32, #tpu.memory_space<vmem>>, vector<1x64xf32>
    %7 = vector.broadcast %6 : vector<1x64xf32> to vector<256x64xf32>
    %8 = arith.addf %5, %7 : vector<256x64xf32>
    %cst_7 = arith.constant 0.000000e+00 : f32
    %9 = vector.broadcast %cst_7 : f32 to vector<256x64xf32>
    %10 = arith.maximumf %8, %9 : vector<256x64xf32>
    %11 = arith.truncf %10 : vector<256x64xf32> to vector<256x64xbf16>
    %c0_8 = arith.constant 0 : index
    %c0_9 = arith.constant 0 : index
    %12 = vector.load %arg6[%c0_8, %c0_9] : memref<256x64xbf16, #tpu.memory_space<vmem>>, vector<256x64xbf16>
    tpu.vector_store %arg6[%c0_8, %c0_9], %11 {strides = array<i32>} : memref<256x64xbf16, #tpu.memory_space<vmem>>, vector<256x64xbf16>,
    return
  }
  func.func @transform_0(%arg0: i32, %arg1: i32) -> (i32, i32) {
    %c0_i32 = arith.constant 0 : i32
    %c0_i32_0 = arith.constant 0 : i32
    return %arg0, %c0_i32 : i32, i32
  }
  func.func @transform_1(%arg0: i32, %arg1: i32) -> (i32, i32) {
    %c0_i32 = arith.constant 0 : i32
    %c0_i32_0 = arith.constant 0 : i32
    return %c0_i32, %arg1 : i32, i32
  }
  func.func @transform_2(%arg0: i32, %arg1: i32) -> (i32, i32) {
    %c0_i32 = arith.constant 0 : i32
    %c0_i32_0 = arith.constant 0 : i32
    return %c0_i32, %arg1 : i32, i32
  }
  func.func @transform_3(%arg0: i32, %arg1: i32) -> (i32, i32) {
    %c0_i32 = arith.constant 0 : i32
    %c0_i32_0 = arith.constant 0 : i32
    return %c0_i32, %arg1 : i32, i32
  }
  func.func @transform_4(%arg0: i32, %arg1: i32) -> (i32, i32) {
    %c0_i32 = arith.constant 0 : i32
    return %arg0, %arg1 : i32, i32
  }
}

</mosaic_0001>

<bundles_post_ra>
// kernel: _conv2d_impl.1
= control target key start
LH: loop header
LB: loop body
LE: loop exit
PB: predicated region body
PF: predicated region fallthrough
CT: control target
= control target key end

     0   :  { %9 = vsyncpa [#allocation3], 0  ;;  %s1857_s0 = inlined_call_operand.vmem [shape: bf16[512,147], index: 0, kind: input, shape index: {}]   ;;  %s1858_s1 = inlined_call_operand.vmem [shape: bf16[147,64], index: 1, kind: input, shape index: {}]   ;;  %s1859_s2 = inlined_call_operand.vmem [shape: f32[1,64], index: 2, kind: input, shape index: {}]   ;;  %s1860_s3 = inlined_call_operand.vmem [shape: f32[1,64], index: 3, kind: input, shape index: {}]   ;;  %s1861_s4 = inlined_call_operand.hbm [shape: bf16[512,64], index: 4, kind: output, shape index: {}]  }
   0x1   :  { %11 = vsyncpa [#allocation3 + $0x1], 0  ;;  %s1518_s15 = smov 0   ;;  %s1520_s16 = smov 0  }
   0x2   :  { %s1522_s17 = smov 0   ;;  %s1524_s18 = smov 0  }
   0x3   :  { %s1526_s19 = smov 0   ;;  %s1528_s20 = smov 0  }
   0x4 LB: > { %s1128_s21 = sadd.s32 4294967295, %s1486_s20   ;;  %s1129_s22 = sadd.s32 4294967294, %s1486_s20   ;;  %s1486_s20 = sphi %s1528_s20, %s17_s20   ;;  %s1482_s19 = sphi %s1526_s19, %s1868_s19   ;;  %s1478_s18 = sphi %s1524_s18, %s1867_s18   ;;  %s1474_s17 = sphi %s1522_s17, %s1866_s17   ;;  %s1470_s16 = sphi %s1520_s16, %s1865_s16   ;;  %s1466_s15 = sphi %s1518_s15, %s1864_s15  }
   0x5   : > { %s29_s23 = sadd.s32 1, %s1482_s19  ;;  %s142_s24 = sadd.s32 1, %s1474_s17 }
   0x6   : > { %p31_p0 = scmp.ge.s32.totalorder %s29_s23, 2  ;;  %p152_p1 = scmp.ne.s32.totalorder %s1474_s17, %s1470_s16 }
   0x7   : > { %p153_p2 = scmp.eq.s32.totalorder %s1128_s21, 1  ;;  %p158_p3 = scmp.ne.s32.totalorder %s1470_s16, %s1466_s15 }
   0x8   : > { %s1870_s23 = smov (%p31_p0, %s29_s23), 0  ;;  %p159_p5 = scmp.eq.s32.totalorder %s1129_s22, 1 }
   0x9   : > { %p1558_p4 = por %p153_p2, %p152_p1  ;;  %s137_s26 = ssub.s32 %s1482_s19, %s1870_s23 }
   0xa   : > { %p1135_p6 = scmp.ge.s32.totalorder %s1486_s20, 1  ;;  %p140_p7 = scmp.eq.s32.totalorder %s137_s26, 0 }
   0xb   : > { %p1565_p8 = por %p159_p5, %p158_p3  ;;  %p206_p9 = scmp.lt.s32.totalorder %s1486_s20, 3 }
   0xc   : > { %s1571_s28 = scalar_select %p140_p7, %s1474_s17, %s142_s24  }
   0xd   : > { %p207_p10 = pnand %p1135_p6, %p206_p9 }
   0xe   : > { %v1350_v0 = vld [vmem:[%s1858_s1] sm:$0xff] (!%p207_p10)   ;;  %v1488_v1 = vmov (!%p207_p10), 0   ;;  %v1351_v2 = vld [vmem:[%s1858_s1 + $0x8] sm:$0xff] (!%p207_p10)   ;;  %v1352_v3 = vld [vmem:[%s1858_s1 + $0x10] sm:$0xff] (!%p207_p10)   ;;  %s1137_s9 = sshll.u32 (!%p207_p10), %s1478_s18, 5  ;;  %vm514_vm0 = vcmask (!%p207_p10), 154624  }
   0xf   : > { %210 = sbr.rel (%p207_p10) target bundleno = 348 (0x15c), region = 36  ;;  %570 = vmatprep.subr.bf16.mxu0 (!%p207_p10), %v1488_v1  ;;  %1271 = vmatprep.subr.bf16.mxu1 (!%p207_p10), %v1488_v1  ;;  %p244_p11 = scmp.lt.s32.totalorder (!%p207_p10), %s1137_s9, 63  ;;  %v1353_v4 = vld [vmem:[%s1858_s1 + $0x18] sm:$0xff] (!%p207_p10)   ;;  %v1354_v5 = vld [vmem:[%s1858_s1 + $0x20] sm:$0xff] (!%p207_p10)   ;;  %v1355_v8 = vld [vmem:[%s1858_s1 + $0x28] sm:$0xff] (!%p207_p10)   ;;  %vm563_vm1 = vcmask (!%p207_p10), 1040384  }
  0x10   : > { %571 = vmatpush1.bf16.msra.mxu0 (!%p207_p10), %v1350_v0  ;;  %1281 = vmatpush1.bf16.msra.mxu1 (!%p207_p10), %v1350_v0  ;;  %v1356_v9 = vld [vmem:[%s1858_s1 + $0x30] sm:$0xff] (!%p207_p10)   ;;  %v1357_v10 = vld [vmem:[%s1858_s1 + $0x38] sm:$0xff] (!%p207_p10)   ;;  %vm564_vm2 = vcmask (!%p207_p10), 1041408   ;;  %v1489_v11 = vmov (!%p207_p10), 65535   ;;  %v1358_v13 = vld [vmem:[%s1858_s1 + $0x40] sm:$0xff] (!%p207_p10)   ;;  %s240_s14 = sand.u32 (!%p207_p10), 1, %s1470_s16  }
  0x11   : > { %572 = vmatprep.subr.bf16.mxu0 (!%p207_p10), %v1488_v1  ;;  %1272 = vmatprep.subr.bf16.mxu1 (!%p207_p10), %v1488_v1  ;;  %v565_v12 = vsel (!%p207_p10), %vm563_vm1, 4294967295, %v1489_v11  ;;  %v1359_v14 = vld [vmem:[%s1858_s1 + $0x48] ss:$0 sps:$4 sm:$0x33] (!%p207_p10)   ;;  %v1660_v47 = vld [vmem:[%s1859_s2] ss:$0 sm:$0xff] (!%p207_p10) }
  0x12   : > { %v566_v15 = vsel (!%p207_p10), %vm564_vm2, %v565_v12, 0  ;;  %v1666_v49 = vld [vmem:[%s1860_s3] ss:$0 sm:$0xff] (!%p207_p10)  ;;  %vm969_vm3 = vcmask (!%p207_p10), 519168   ;;  %s1270_s29 = sshll.u32 (!%p207_p10), %s1478_s18, 11  ;;  %s1811_s18 = scalar_lea.sflag (!%p207_p10), [#allocation3], %s240_s14 }
  0x13   : > { %v568_v16 = vand.u32 (!%p207_p10), %v1359_v14, %v566_v15  ;;  %s1797_s7 = scalar_lea.hbm (!%p207_p10), %s1861_s4, %s1270_s29 }
  0x14   : > { %573 = vmatpush1.bf16.msra.mxu0 (!%p207_p10), %v1351_v2  ;;  %1282 = vmatpush1.bf16.msra.mxu1 (!%p207_p10), %v1351_v2 }
  0x15   : > { %574 = vmatprep.subr.bf16.mxu0 (!%p207_p10), %v1488_v1  ;;  %1273 = vmatprep.subr.bf16.mxu1 (!%p207_p10), %v1488_v1 }
  0x16   : > { %s1872_s9 = smov (!%p244_p11, %s1137_s9), 63 }
  0x17   : > { %s1237_s12 = sshll.u32 %s1872_s9, 3  ;;  %s1490_s9 = smov [#allocation2]  }
  0x18   : > { %575 = vmatpush1.bf16.msra.mxu0 %v1352_v3  ;;  %1283 = vmatpush1.bf16.msra.mxu1 %v1352_v3  ;;  %s1589_s21 = scalar_lea.vmem %s1857_s0, %s1237_s12  ;;  %s1412_s10 = sshll.u32 %s1490_s9, 4  ;;  %s1413_s10 = int_to_ptr.vmem [resolvable:$false] %s1412_s10 }
  0x19   : > { %576 = vmatprep.subr.bf16.mxu0 %v1488_v1  ;;  %1274 = vmatprep.subr.bf16.mxu1 %v1488_v1  ;;  %v1362_v6 = vld [vmem:[%s1589_s21 + $0x4] ss:$8 sps:$4 sm:$0xff]   ;;  %v1360_v17 = vld [vmem:[%s1589_s21] ss:$8 sps:$4 sm:$0xff]   ;;  %v1366_v19 = vld [vmem:[%s1589_s21 + $0x14] ss:$8 sps:$4 sm:$0xff]  }
  0x1a   : > { %v1365_v7 = vld [vmem:[%s1589_s21 + $0x84] ss:$8 sps:$4 sm:$0xff]   ;;  %1182 = vmatprep.mubr.msk.bf16.mxu0 %vm514_vm0, %v1362_v6  ;;  %v1363_v18 = vld [vmem:[%s1589_s21 + $0x80] ss:$8 sps:$4 sm:$0xff]   ;;  %v1368_v20 = vld [vmem:[%s1589_s21 + $0x94] ss:$8 sps:$4 sm:$0xff]  }
  0x1b   : > { %1190 = vmatprep.mubr.msk.bf16.mxu1 %vm514_vm0, %v1365_v7  ;;  %v1370_v21 = vld [vmem:[%s1589_s21 + $0x10] ss:$8 sps:$4 sm:$0xff]   ;;  %v1372_v23 = vld [vmem:[%s1589_s21 + $0x24] ss:$8 sps:$4 sm:$0xff]   ;;  %v1376_v25 = vld [vmem:[%s1589_s21 + $0x20] ss:$8 sps:$4 sm:$0xff]  }
  0x1c   : > { %577 = vmatpush1.bf16.msra.mxu0 %v1353_v4  ;;  %1284 = vmatpush1.bf16.msra.mxu1 %v1353_v4  ;;  %v1371_v22 = vld [vmem:[%s1589_s21 + $0x90] ss:$8 sps:$4 sm:$0xff]   ;;  %v1374_v24 = vld [vmem:[%s1589_s21 + $0xa4] ss:$8 sps:$4 sm:$0xff]   ;;  %v1377_v26 = vld [vmem:[%s1589_s21 + $0xa0] ss:$8 sps:$4 sm:$0xff]  }
  0x1d   : > { %578 = vmatprep.subr.bf16.mxu0 %v1488_v1  ;;  %1275 = vmatprep.subr.bf16.mxu1 %v1488_v1  ;;  %v1378_v27 = vld [vmem:[%s1589_s21 + $0x34] ss:$8 sps:$4 sm:$0xff]   ;;  %v1382_v29 = vld [vmem:[%s1589_s21 + $0x30] ss:$8 sps:$4 sm:$0xff]   ;;  %v1384_v31 = vld [vmem:[%s1589_s21 + $0x44] ss:$8 sps:$4 sm:$0xff]  }
  0x1e   : > { %v1380_v28 = vld [vmem:[%s1589_s21 + $0xb4] ss:$8 sps:$4 sm:$0xff]   ;;  %v1383_v30 = vld [vmem:[%s1589_s21 + $0xb0] ss:$8 sps:$4 sm:$0xff]   ;;  %v1386_v32 = vld [vmem:[%s1589_s21 + $0xc4] ss:$8 sps:$4 sm:$0xff]  }
  0x1f   : > { %v1388_v33 = vld [vmem:[%s1589_s21 + $0x40] ss:$8 sps:$4 sm:$0xff]   ;;  %v1390_v35 = vld [vmem:[%s1589_s21 + $0x54] ss:$8 sps:$4 sm:$0xff]   ;;  %v1394_v37 = vld [vmem:[%s1589_s21 + $0x50] ss:$8 sps:$4 sm:$0xff]  }
  0x20   : > { %579 = vmatpush1.bf16.msra.mxu0 %v1354_v5  ;;  %1285 = vmatpush1.bf16.msra.mxu1 %v1354_v5  ;;  %v1389_v34 = vld [vmem:[%s1589_s21 + $0xc0] ss:$8 sps:$4 sm:$0xff]   ;;  %v1392_v36 = vld [vmem:[%s1589_s21 + $0xd4] ss:$8 sps:$4 sm:$0xff]   ;;  %v1395_v38 = vld [vmem:[%s1589_s21 + $0xd0] ss:$8 sps:$4 sm:$0xff]  }
  0x21   : > { %580 = vmatprep.subr.bf16.mxu0 %v1488_v1  ;;  %1276 = vmatprep.subr.bf16.mxu1 %v1488_v1  ;;  %v1396_v39 = vld [vmem:[%s1589_s21 + $0x64] ss:$8 sps:$4 sm:$0xff]   ;;  %v1400_v41 = vld [vmem:[%s1589_s21 + $0x60] ss:$8 sps:$4 sm:$0xff]   ;;  %v1402_v43 = vld [vmem:[%s1589_s21 + $0x74] ss:$8 sps:$4 sm:$0xff]  }
  0x22   : > { %v1398_v40 = vld [vmem:[%s1589_s21 + $0xe4] ss:$8 sps:$4 sm:$0xff]   ;;  %v1401_v42 = vld [vmem:[%s1589_s21 + $0xe0] ss:$8 sps:$4 sm:$0xff]   ;;  %v1404_v44 = vld [vmem:[%s1589_s21 + $0xf4] ss:$8 sps:$4 sm:$0xff]  }
  0x23   : > { %v1406_v45 = vld [vmem:[%s1589_s21 + $0x70] ss:$8 sps:$4 sm:$0xff]   ;;  %s1414_s11 = scalar_lea.vmem %s1413_s10, 4096 }
  0x24   : > { %581 = vmatpush1.bf16.msra.mxu0 %v1355_v8  ;;  %1286 = vmatpush1.bf16.msra.mxu1 %v1355_v8  ;;  %v1407_v46 = vld [vmem:[%s1589_s21 + $0xf0] ss:$8 sps:$4 sm:$0xff]   ;;  %s1136_s21 = sshll.u32 %s240_s14, 7 }
  0x25   : > { %582 = vmatprep.subr.bf16.mxu0 %v1488_v1  ;;  %1277 = vmatprep.subr.bf16.mxu1 %v1488_v1  ;;  %s1678_s26 = scalar_lea.vmem [#allocation2], %s1136_s21 }
  0x26   : > { %s1017_s30 = sshll.u32 %s1678_s26, 4  ;;  %s1799_s30 = int_to_ptr.vmem [resolvable:$true] %s1017_s30 }
  0x27   : > { %s1408_s8 = scalar_lea.vmem %s1799_s30, 2048  ;;  %p1415_p1 = scmp.lt.s32.totalorder %s1799_s30, %s1413_s10 }
  0x28   : > { %583 = vmatpush1.bf16.msra.mxu0 %v1356_v9  ;;  %1287 = vmatpush1.bf16.msra.mxu1 %v1356_v9  ;;  %p1409_p12 = scmp.ne.s32.totalorder %s1799_s30, %s1408_s8  ;;  %p1416_p2 = scmp.lt.s32.totalorder %s1414_s11, %s1408_s8 }
  0x29   : > { %584 = vmatprep.subr.bf16.mxu0 %v1488_v1  ;;  %1278 = vmatprep.subr.bf16.mxu1 %v1488_v1 }
  0x2a   : > { %p1410_p13 = pnand %p1409_p12, %p1558_p4  ;;  %p1417_p3 = por %p1416_p2, %p1415_p1 }
  0x2c   : > { %585 = vmatpush1.bf16.msra.mxu0 %v1357_v10  ;;  %1288 = vmatpush1.bf16.msra.mxu1 %v1357_v10  ;;  %p1411_p0 = pneg %p1410_p13 }
  0x2d   : > { %586 = vmatprep.subr.bf16.mxu0 %v1488_v1  ;;  %1279 = vmatprep.subr.bf16.mxu1 %v1488_v1 }
  0x2e   : > { %p1418_p5 = pnand %p1417_p3, %p1411_p0 }
  0x30   : > { %587 = vmatpush1.bf16.msra.mxu0 %v1358_v13  ;;  %1289 = vmatpush1.bf16.msra.mxu1 %v1358_v13 }
  0x31   : > { %588 = vmatprep.subr.bf16.mxu0 %v1488_v1  ;;  %1280 = vmatprep.subr.bf16.mxu1 %v1488_v1 }
  0x34   : > { %589 = vmatpush1.bf16.msra.mxu0 %v568_v16  ;;  %1290 = vmatpush1.bf16.msra.mxu1 %v568_v16 }
  0x37   : > { %603 = vmatmul.mubr.bf16.vlgmr.msra.gmra.mrb[0].mxu0 %v1360_v17  ;;  %667 = vmatmul.mubr.bf16.vlgmr.msra.gmra.mrb[0].mxu1 %v1363_v18 }
  0x38   : > { %1183 = vmatprep.mubr.msk.bf16.mxu0 %vm514_vm0, %v1366_v19  ;;  %1191 = vmatprep.mubr.msk.bf16.mxu1 %vm514_vm0, %v1368_v20 }
  0x3f   : > { %611 = vmatmul.mubr.bf16.gmra.mrb[4].mxu0 %v1370_v21  ;;  %675 = vmatmul.mubr.bf16.gmra.mrb[4].mxu1 %v1371_v22 }
  0x40   : > { %1184 = vmatprep.mubr.msk.bf16.mxu0 %vm514_vm0, %v1372_v23  ;;  %1192 = vmatprep.mubr.msk.bf16.mxu1 %vm514_vm0, %v1374_v24 }
  0x47   : > { %619 = vmatmul.mubr.bf16.gmra.mrb[8].mxu0 %v1376_v25  ;;  %683 = vmatmul.mubr.bf16.gmra.mrb[8].mxu1 %v1377_v26 }
  0x48   : > { %1185 = vmatprep.mubr.msk.bf16.mxu0 %vm514_vm0, %v1378_v27  ;;  %1193 = vmatprep.mubr.msk.bf16.mxu1 %vm514_vm0, %v1380_v28 }
  0x4f   : > { %627 = vmatmul.mubr.bf16.gmra.mrb[12].mxu0 %v1382_v29  ;;  %691 = vmatmul.mubr.bf16.gmra.mrb[12].mxu1 %v1383_v30 }
  0x50   : > { %1186 = vmatprep.mubr.msk.bf16.mxu0 %vm514_vm0, %v1384_v31  ;;  %1194 = vmatprep.mubr.msk.bf16.mxu1 %vm514_vm0, %v1386_v32 }
  0x57   : > { %635 = vmatmul.mubr.bf16.gmra.mrb[16].mxu0 %v1388_v33  ;;  %699 = vmatmul.mubr.bf16.gmra.mrb[16].mxu1 %v1389_v34 }
  0x58   : > { %1187 = vmatprep.mubr.msk.bf16.mxu0 %vm514_vm0, %v1390_v35  ;;  %1195 = vmatprep.mubr.msk.bf16.mxu1 %vm514_vm0, %v1392_v36 }
  0x5f   : > { %643 = vmatmul.mubr.bf16.gmra.mrb[20].mxu0 %v1394_v37  ;;  %707 = vmatmul.mubr.bf16.gmra.mrb[20].mxu1 %v1395_v38 }
  0x60   : > { %1188 = vmatprep.mubr.msk.bf16.mxu0 %vm514_vm0, %v1396_v39  ;;  %1196 = vmatprep.mubr.msk.bf16.mxu1 %vm514_vm0, %v1398_v40 }
  0x67   : > { %651 = vmatmul.mubr.bf16.gmra.mrb[24].mxu0 %v1400_v41  ;;  %715 = vmatmul.mubr.bf16.gmra.mrb[24].mxu1 %v1401_v42 }
  0x68   : > { %1189 = vmatprep.mubr.msk.bf16.mxu0 %vm514_vm0, %v1402_v43  ;;  %1197 = vmatprep.mubr.msk.bf16.mxu1 %vm514_vm0, %v1404_v44 }
  0x6f   : > { %659 = vmatmul.mubr.bf16.gmra.mrb[28].mxu0 %v1406_v45  ;;  %723 = vmatmul.mubr.bf16.gmra.mrb[28].mxu1 %v1407_v46 }
 0x10a   : > { %v604_v48 = vpop.f32.mrb[0].mxu0  ;;  %v668_v50 = vpop.f32.mrb[0].mxu1 }
 0x10b   : > { %v738_v51 = vmul.f32 %v1660_v47, %v604_v48  ;;  %v754_v52 = vmul.f32 %v1660_v47, %v668_v50  ;;  %v606_v53 = vpop.f32.mrb[1].mxu0  ;;  %v670_v54 = vpop.f32.mrb[1].mxu1 }
 0x10c   : > { %v607_v55 = vpop.f32.mrb[2].mxu0  ;;  %v671_v56 = vpop.f32.mrb[2].mxu1 }
 0x10d   : > { %v777_v57 = vadd.f32 %v1666_v49, %v738_v51  ;;  %v793_v58 = vadd.f32 %v1666_v49, %v754_v52  ;;  %v739_v59 = vmul.f32 %v1660_v47, %v607_v55  ;;  %v755_v60 = vmul.f32 %v1660_v47, %v671_v56  ;;  %v609_v61 = vpop.f32.mrb[3].mxu0  ;;  %v673_v62 = vpop.f32.mrb[3].mxu1 }
 0x10f   : > { %v809_v63 = vmax.f32 %v777_v57, 0.0  ;;  %v825_v0 = vmax.f32 %v793_v58, 0.0  ;;  %v778_v1 = vadd.f32 %v1666_v49, %v739_v59  ;;  %v794_v2 = vadd.f32 %v1666_v49, %v755_v60 }
 0x111   : > { %v1238_v3 = vpack.c.bf16 %v809_v63, %v809_v63  ;;  %v1254_v4 = vpack.c.bf16 %v825_v0, %v825_v0  ;;  %v810_v5 = vmax.f32 %v778_v1, 0.0  ;;  %v826_v6 = vmax.f32 %v794_v2, 0.0 }
 0x112   : > { %v612_v7 = vpop.f32.mrb[4].mxu0  ;;  %v676_v8 = vpop.f32.mrb[4].mxu1 }
 0x113   : > { %970 = vst.msk [vmem:[%s1678_s26] sm:$0xf] %vm969_vm3, %v1238_v3  ;;  %986 = vst.msk [vmem:[%s1678_s26 + $0x40] sm:$0xf] %vm969_vm3, %v1254_v4  ;;  %v1239_v9 = vpack.c.bf16 %v810_v5, %v810_v5  ;;  %v1255_v10 = vpack.c.bf16 %v826_v6, %v826_v6  ;;  %v740_v11 = vmul.f32 %v1660_v47, %v612_v7  ;;  %v614_v13 = vpop.f32.mrb[5].mxu0  ;;  %v678_v14 = vpop.f32.mrb[5].mxu1 }
 0x114   : > { %v756_v12 = vmul.f32 %v1660_v47, %v676_v8  ;;  %v615_v15 = vpop.f32.mrb[6].mxu0  ;;  %v679_v16 = vpop.f32.mrb[6].mxu1 }
 0x115   : > { %971 = vst.msk [vmem:[%s1678_s26 + $0x4] sm:$0xf] %vm969_vm3, %v1239_v9  ;;  %987 = vst.msk [vmem:[%s1678_s26 + $0x44] sm:$0xf] %vm969_vm3, %v1255_v10  ;;  %v779_v17 = vadd.f32 %v1666_v49, %v740_v11  ;;  %v741_v19 = vmul.f32 %v1660_v47, %v615_v15  ;;  %v757_v20 = vmul.f32 %v1660_v47, %v679_v16  ;;  %v617_v21 = vpop.f32.mrb[7].mxu0  ;;  %v681_v22 = vpop.f32.mrb[7].mxu1 }
 0x116   : > { %v795_v18 = vadd.f32 %v1666_v49, %v756_v12 }
 0x117   : > { %v811_v23 = vmax.f32 %v779_v17, 0.0  ;;  %v780_v25 = vadd.f32 %v1666_v49, %v741_v19  ;;  %v796_v26 = vadd.f32 %v1666_v49, %v757_v20 }
 0x118   : > { %v827_v24 = vmax.f32 %v795_v18, 0.0 }
 0x119   : > { %v1240_v27 = vpack.c.bf16 %v811_v23, %v811_v23  ;;  %v812_v29 = vmax.f32 %v780_v25, 0.0  ;;  %v828_v30 = vmax.f32 %v796_v26, 0.0 }
 0x11a   : > { %v1256_v28 = vpack.c.bf16 %v827_v24, %v827_v24  ;;  %v620_v31 = vpop.f32.mrb[8].mxu0  ;;  %v684_v32 = vpop.f32.mrb[8].mxu1 }
 0x11b   : > { %972 = vst.msk [vmem:[%s1678_s26 + $0x8] sm:$0xf] %vm969_vm3, %v1240_v27  ;;  %v1241_v33 = vpack.c.bf16 %v812_v29, %v812_v29  ;;  %v1257_v34 = vpack.c.bf16 %v828_v30, %v828_v30  ;;  %v742_v35 = vmul.f32 %v1660_v47, %v620_v31  ;;  %v758_v36 = vmul.f32 %v1660_v47, %v684_v32  ;;  %v622_v37 = vpop.f32.mrb[9].mxu0  ;;  %v686_v38 = vpop.f32.mrb[9].mxu1 }
 0x11c   : > { %988 = vst.msk [vmem:[%s1678_s26 + $0x48] sm:$0xf] %vm969_vm3, %v1256_v28  ;;  %v623_v39 = vpop.f32.mrb[10].mxu0  ;;  %v687_v40 = vpop.f32.mrb[10].mxu1 }
 0x11d   : > { %973 = vst.msk [vmem:[%s1678_s26 + $0xc] sm:$0xf] %vm969_vm3, %v1241_v33  ;;  %989 = vst.msk [vmem:[%s1678_s26 + $0x4c] sm:$0xf] %vm969_vm3, %v1257_v34  ;;  %v781_v41 = vadd.f32 %v1666_v49, %v742_v35  ;;  %v797_v42 = vadd.f32 %v1666_v49, %v758_v36  ;;  %v743_v43 = vmul.f32 %v1660_v47, %v623_v39  ;;  %v625_v45 = vpop.f32.mrb[11].mxu0  ;;  %v689_v46 = vpop.f32.mrb[11].mxu1 }
 0x11e   : > { %v759_v44 = vmul.f32 %v1660_v47, %v687_v40 }
 0x11f   : > { %v813_v48 = vmax.f32 %v781_v41, 0.0  ;;  %v829_v50 = vmax.f32 %v797_v42, 0.0  ;;  %v782_v51 = vadd.f32 %v1666_v49, %v743_v43 }
 0x120   : > { %v798_v52 = vadd.f32 %v1666_v49, %v759_v44 }
 0x121   : > { %v1242_v53 = vpack.c.bf16 %v813_v48, %v813_v48  ;;  %v1258_v54 = vpack.c.bf16 %v829_v50, %v829_v50  ;;  %v814_v55 = vmax.f32 %v782_v51, 0.0 }
 0x122   : > { %v830_v56 = vmax.f32 %v798_v52, 0.0  ;;  %v628_v57 = vpop.f32.mrb[12].mxu0  ;;  %v692_v58 = vpop.f32.mrb[12].mxu1 }
 0x123   : > { %974 = vst.msk [vmem:[%s1678_s26 + $0x10] sm:$0xf] %vm969_vm3, %v1242_v53  ;;  %990 = vst.msk [vmem:[%s1678_s26 + $0x50] sm:$0xf] %vm969_vm3, %v1258_v54  ;;  %v1243_v59 = vpack.c.bf16 %v814_v55, %v814_v55  ;;  %v744_v61 = vmul.f32 %v1660_v47, %v628_v57  ;;  %v760_v62 = vmul.f32 %v1660_v47, %v692_v58  ;;  %v630_v63 = vpop.f32.mrb[13].mxu0  ;;  %v694_v0 = vpop.f32.mrb[13].mxu1 }
 0x124   : > { %v1259_v60 = vpack.c.bf16 %v830_v56, %v830_v56  ;;  %v631_v1 = vpop.f32.mrb[14].mxu0  ;;  %v695_v2 = vpop.f32.mrb[14].mxu1 }
 0x125   : > { %975 = vst.msk [vmem:[%s1678_s26 + $0x14] sm:$0xf] %vm969_vm3, %v1243_v59  ;;  %v783_v3 = vadd.f32 %v1666_v49, %v744_v61  ;;  %v799_v4 = vadd.f32 %v1666_v49, %v760_v62  ;;  %v745_v5 = vmul.f32 %v1660_v47, %v631_v1  ;;  %v761_v6 = vmul.f32 %v1660_v47, %v695_v2  ;;  %v633_v7 = vpop.f32.mrb[15].mxu0  ;;  %v697_v8 = vpop.f32.mrb[15].mxu1 }
 0x126   : > { %991 = vst.msk [vmem:[%s1678_s26 + $0x54] sm:$0xf] %vm969_vm3, %v1259_v60 }
 0x127   : > { %v815_v9 = vmax.f32 %v783_v3, 0.0  ;;  %v831_v10 = vmax.f32 %v799_v4, 0.0  ;;  %v784_v11 = vadd.f32 %v1666_v49, %v745_v5  ;;  %v800_v12 = vadd.f32 %v1666_v49, %v761_v6 }
 0x129   : > { %v1244_v13 = vpack.c.bf16 %v815_v9, %v815_v9  ;;  %v1260_v14 = vpack.c.bf16 %v831_v10, %v831_v10  ;;  %v816_v15 = vmax.f32 %v784_v11, 0.0  ;;  %v832_v16 = vmax.f32 %v800_v12, 0.0 }
 0x12a   : > { %v636_v17 = vpop.f32.mrb[16].mxu0  ;;  %v700_v18 = vpop.f32.mrb[16].mxu1 }
 0x12b   : > { %976 = vst.msk [vmem:[%s1678_s26 + $0x18] sm:$0xf] %vm969_vm3, %v1244_v13  ;;  %992 = vst.msk [vmem:[%s1678_s26 + $0x58] sm:$0xf] %vm969_vm3, %v1260_v14  ;;  %v1245_v19 = vpack.c.bf16 %v816_v15, %v816_v15  ;;  %v1261_v20 = vpack.c.bf16 %v832_v16, %v832_v16  ;;  %v746_v21 = vmul.f32 %v1660_v47, %v636_v17  ;;  %v638_v23 = vpop.f32.mrb[17].mxu0  ;;  %v702_v24 = vpop.f32.mrb[17].mxu1 }
 0x12c   : > { %v762_v22 = vmul.f32 %v1660_v47, %v700_v18  ;;  %v639_v25 = vpop.f32.mrb[18].mxu0  ;;  %v703_v26 = vpop.f32.mrb[18].mxu1 }
 0x12d   : > { %977 = vst.msk [vmem:[%s1678_s26 + $0x1c] sm:$0xf] %vm969_vm3, %v1245_v19  ;;  %993 = vst.msk [vmem:[%s1678_s26 + $0x5c] sm:$0xf] %vm969_vm3, %v1261_v20  ;;  %v785_v27 = vadd.f32 %v1666_v49, %v746_v21  ;;  %v747_v29 = vmul.f32 %v1660_v47, %v639_v25  ;;  %v763_v30 = vmul.f32 %v1660_v47, %v703_v26  ;;  %v641_v31 = vpop.f32.mrb[19].mxu0  ;;  %v705_v32 = vpop.f32.mrb[19].mxu1 }
 0x12e   : > { %v801_v28 = vadd.f32 %v1666_v49, %v762_v22 }
 0x12f   : > { %v817_v33 = vmax.f32 %v785_v27, 0.0  ;;  %v786_v35 = vadd.f32 %v1666_v49, %v747_v29  ;;  %v802_v36 = vadd.f32 %v1666_v49, %v763_v30 }
 0x130   : > { %v833_v34 = vmax.f32 %v801_v28, 0.0 }
 0x131   : > { %v1246_v37 = vpack.c.bf16 %v817_v33, %v817_v33  ;;  %v818_v39 = vmax.f32 %v786_v35, 0.0  ;;  %v834_v40 = vmax.f32 %v802_v36, 0.0 }
 0x132   : > { %v1262_v38 = vpack.c.bf16 %v833_v34, %v833_v34  ;;  %v644_v41 = vpop.f32.mrb[20].mxu0  ;;  %v708_v42 = vpop.f32.mrb[20].mxu1 }
 0x133   : > { %978 = vst.msk [vmem:[%s1678_s26 + $0x20] sm:$0xf] %vm969_vm3, %v1246_v37  ;;  %v1247_v43 = vpack.c.bf16 %v818_v39, %v818_v39  ;;  %v1263_v44 = vpack.c.bf16 %v834_v40, %v834_v40  ;;  %v748_v45 = vmul.f32 %v1660_v47, %v644_v41  ;;  %v764_v46 = vmul.f32 %v1660_v47, %v708_v42  ;;  %v646_v48 = vpop.f32.mrb[21].mxu0  ;;  %v710_v50 = vpop.f32.mrb[21].mxu1 }
 0x134   : > { %994 = vst.msk [vmem:[%s1678_s26 + $0x60] sm:$0xf] %vm969_vm3, %v1262_v38  ;;  %v647_v51 = vpop.f32.mrb[22].mxu0  ;;  %v711_v52 = vpop.f32.mrb[22].mxu1 }
 0x135   : > { %979 = vst.msk [vmem:[%s1678_s26 + $0x24] sm:$0xf] %vm969_vm3, %v1247_v43  ;;  %995 = vst.msk [vmem:[%s1678_s26 + $0x64] sm:$0xf] %vm969_vm3, %v1263_v44  ;;  %v787_v53 = vadd.f32 %v1666_v49, %v748_v45  ;;  %v803_v54 = vadd.f32 %v1666_v49, %v764_v46  ;;  %v749_v55 = vmul.f32 %v1660_v47, %v647_v51  ;;  %v649_v57 = vpop.f32.mrb[23].mxu0  ;;  %v713_v58 = vpop.f32.mrb[23].mxu1 }
 0x136   : > { %v765_v56 = vmul.f32 %v1660_v47, %v711_v52 }
 0x137   : > { %v819_v59 = vmax.f32 %v787_v53, 0.0  ;;  %v835_v60 = vmax.f32 %v803_v54, 0.0  ;;  %v788_v61 = vadd.f32 %v1666_v49, %v749_v55 }
 0x138   : > { %v804_v62 = vadd.f32 %v1666_v49, %v765_v56 }
 0x139   : > { %v1248_v63 = vpack.c.bf16 %v819_v59, %v819_v59  ;;  %v1264_v0 = vpack.c.bf16 %v835_v60, %v835_v60  ;;  %v820_v1 = vmax.f32 %v788_v61, 0.0 }
 0x13a   : > { %v836_v2 = vmax.f32 %v804_v62, 0.0  ;;  %v652_v3 = vpop.f32.mrb[24].mxu0  ;;  %v716_v4 = vpop.f32.mrb[24].mxu1 }
 0x13b   : > { %980 = vst.msk [vmem:[%s1678_s26 + $0x28] sm:$0xf] %vm969_vm3, %v1248_v63  ;;  %996 = vst.msk [vmem:[%s1678_s26 + $0x68] sm:$0xf] %vm969_vm3, %v1264_v0  ;;  %v1249_v5 = vpack.c.bf16 %v820_v1, %v820_v1  ;;  %v750_v7 = vmul.f32 %v1660_v47, %v652_v3  ;;  %v766_v8 = vmul.f32 %v1660_v47, %v716_v4  ;;  %v654_v9 = vpop.f32.mrb[25].mxu0  ;;  %v718_v10 = vpop.f32.mrb[25].mxu1 }
 0x13c   : > { %v1265_v6 = vpack.c.bf16 %v836_v2, %v836_v2  ;;  %v655_v11 = vpop.f32.mrb[26].mxu0  ;;  %v719_v12 = vpop.f32.mrb[26].mxu1 }
 0x13d   : > { %981 = vst.msk [vmem:[%s1678_s26 + $0x2c] sm:$0xf] %vm969_vm3, %v1249_v5  ;;  %v789_v13 = vadd.f32 %v1666_v49, %v750_v7  ;;  %v805_v14 = vadd.f32 %v1666_v49, %v766_v8  ;;  %v751_v15 = vmul.f32 %v1660_v47, %v655_v11  ;;  %v767_v16 = vmul.f32 %v1660_v47, %v719_v12  ;;  %v657_v17 = vpop.f32.mrb[27].mxu0  ;;  %v721_v18 = vpop.f32.mrb[27].mxu1 }
 0x13e   : > { %997 = vst.msk [vmem:[%s1678_s26 + $0x6c] sm:$0xf] %vm969_vm3, %v1265_v6 }
 0x13f   : > { %v821_v19 = vmax.f32 %v789_v13, 0.0  ;;  %v837_v20 = vmax.f32 %v805_v14, 0.0  ;;  %v790_v21 = vadd.f32 %v1666_v49, %v751_v15  ;;  %v806_v22 = vadd.f32 %v1666_v49, %v767_v16 }
 0x141   : > { %v1250_v23 = vpack.c.bf16 %v821_v19, %v821_v19  ;;  %v1266_v24 = vpack.c.bf16 %v837_v20, %v837_v20  ;;  %v822_v25 = vmax.f32 %v790_v21, 0.0  ;;  %v838_v26 = vmax.f32 %v806_v22, 0.0 }
 0x142   : > { %v660_v27 = vpop.f32.mrb[28].mxu0  ;;  %v724_v28 = vpop.f32.mrb[28].mxu1 }
 0x143   : > { %982 = vst.msk [vmem:[%s1678_s26 + $0x30] sm:$0xf] %vm969_vm3, %v1250_v23  ;;  %998 = vst.msk [vmem:[%s1678_s26 + $0x70] sm:$0xf] %vm969_vm3, %v1266_v24  ;;  %v1251_v29 = vpack.c.bf16 %v822_v25, %v822_v25  ;;  %v1267_v30 = vpack.c.bf16 %v838_v26, %v838_v26  ;;  %v752_v31 = vmul.f32 %v1660_v47, %v660_v27  ;;  %v662_v33 = vpop.f32.mrb[29].mxu0  ;;  %v726_v34 = vpop.f32.mrb[29].mxu1 }
 0x144   : > { %v768_v32 = vmul.f32 %v1660_v47, %v724_v28  ;;  %v663_v35 = vpop.f32.mrb[30].mxu0  ;;  %v727_v36 = vpop.f32.mrb[30].mxu1 }
 0x145   : > { %983 = vst.msk [vmem:[%s1678_s26 + $0x34] sm:$0xf] %vm969_vm3, %v1251_v29  ;;  %999 = vst.msk [vmem:[%s1678_s26 + $0x74] sm:$0xf] %vm969_vm3, %v1267_v30  ;;  %v791_v37 = vadd.f32 %v1666_v49, %v752_v31  ;;  %v753_v39 = vmul.f32 %v1660_v47, %v663_v35  ;;  %v769_v40 = vmul.f32 %v1660_v47, %v727_v36  ;;  %v665_v41 = vpop.f32.mrb[31].mxu0  ;;  %v729_v42 = vpop.f32.mrb[31].mxu1 }
 0x146   : > { %v807_v38 = vadd.f32 %v1666_v49, %v768_v32 }
 0x147   : > { %v823_v43 = vmax.f32 %v791_v37, 0.0  ;;  %v792_v45 = vadd.f32 %v1666_v49, %v753_v39  ;;  %v808_v46 = vadd.f32 %v1666_v49, %v769_v40 }
 0x148   : > { %v839_v44 = vmax.f32 %v807_v38, 0.0 }
 0x149   : > { %v1252_v48 = vpack.c.bf16 %v823_v43, %v823_v43  ;;  %v824_v51 = vmax.f32 %v792_v45, 0.0  ;;  %v840_v52 = vmax.f32 %v808_v46, 0.0 }
 0x14a   : > { %v1268_v50 = vpack.c.bf16 %v839_v44, %v839_v44 }
 0x14b   : > { %984 = vst.msk [vmem:[%s1678_s26 + $0x38] sm:$0xf] %vm969_vm3, %v1252_v48  ;;  %v1253_v47 = vpack.c.bf16 %v824_v51, %v824_v51  ;;  %v1269_v49 = vpack.c.bf16 %v840_v52, %v840_v52 }
 0x14c   : > { %1000 = vst.msk [vmem:[%s1678_s26 + $0x78] sm:$0xf] %vm969_vm3, %v1268_v50 }
 0x14d   : > { %985 = vst.msk [vmem:[%s1678_s26 + $0x3c] sm:$0xf] %vm969_vm3, %v1253_v47  ;;  %1001 = vst.msk [vmem:[%s1678_s26 + $0x7c] sm:$0xf] %vm969_vm3, %v1269_v49 }
 0x14e   : > { %1421 = shalt.err (!%p1418_p5)
}
 0x14f   : > { %s1422_s12 = scalar_lea.hbm %s1797_s7, 2048  ;;  %s1426_s22 = scalar_lea.hbm %s1861_s4, 4096 }
 0x150   : > { %p1423_p6 = scmp.ne.s32.totalorder %s1797_s7, %s1422_s12  ;;  %p1427_p10 = scmp.lt.u32.totalorder %s1797_s7, %s1861_s4 }
 0x151   : > { %p1428_p11 = scmp.lt.u32.totalorder %s1426_s22, %s1422_s12  ;;  %p1430_p13 = scmp.lt.u32.totalorder %s1422_s12, %s1797_s7 }
 0x152   : > { %p1424_p7 = pnand %p1423_p6, %p1558_p4 }
 0x153   : > { %p1429_p12 = por %p1428_p11, %p1427_p10 }
 0x154   : > { %p1425_p9 = pneg %p1424_p7 }
 0x155   : > { %p1431_p0 = por %p1430_p13, %p1429_p12 }
 0x157   : > { %p1432_p1 = pnand %p1431_p0, %p1425_p9 }
 0x159   : > { %1435 = shalt.err (!%p1432_p1)
}
 0x15a   : > { %s1491_s26 = smov 64   ;;  %s1492_s29 = smov 4  }
 0x15b   : > { %1291 = dma.vmem_to_hbm [thread:$0]  (%p1558_p4), %s1799_s30, 2048, %s1797_s7, %s1811_s18, %s1491_s26, %s1491_s26, %s1492_s29  }
 0x15c PF: > { %p1297_p2 = scmp.ge.s32.totalorder %s1486_s20, 2  ;;  %s1032_s5 = sand.u32 1, %s1466_s15  }
 0x15d   : > { %s1033_s6 = scalar_lea.sflag [#allocation3], %s1032_s5 }
 0x15e   : > { %p1294_p3 = pnand %p1297_p2, %p1565_p8 }
 0x160   : > { %1461 = dma.done.wait (!%p1294_p3), %s1033_s6, 2048  }
 0x161   : > { %1463 = vsyncadd (!%p1294_p3), %s1033_s6, 4294965248  ;;  %s17_s20 = sadd.s32 1, %s1486_s20   ;;  %s1864_s15 = smov %s1470_s16 }
 0x162   : > { %p14_p5 = scmp.ge.s32.totalorder %s17_s20, 4   ;;  %s1865_s16 = smov %s1474_s17 }
 0x163   : > { %s1866_s17 = smov %s1571_s28  ;;  %s1867_s18 = smov %s1482_s19 }
 0x164   : > { %s1868_s19 = smov %s1870_s23  ;;  %16 = sbr.rel (!%p14_p5) target bundleno = 4 (0x4), region = 80 }
 0x16b   :  { %1038 = vsyncpa [#allocation3], 1 }
 0x16c   :  { %1040 = vsyncpa [#allocation3 + $0x1], 1 }

</bundles_post_ra>
